<compile_context>
chip_gen: v7x
topology: tpu7x:2x2x1
jax: 0.10.0
libtpu: 0.0.40
codegen_flags: <defaults>
</compile_context>

<pallas_src>
import functools

import jax
import jax.numpy as jnp
import numpy as np
from jax.experimental import pallas as pl
from jax.experimental.pallas import tpu as pltpu


def _conv_relu_kernel(x_ref, w_ref, m_ref, o_ref, *, W):
    # x_ref: (Nb, Cin, L)   flat input, L = H*W + 2*W + 2 (zero row above/below + guards)
    # w_ref: (9, Cout, Cin) per-tap weights, tap index t = dy*3 + dx
    # m_ref: (2, HW)        f32 {0,1} column masks: [0]=not_first_col, [1]=not_last_col
    # o_ref: (Nb, Cout, HW) lane-dense output
    Nb, Cin, L = x_ref.shape
    Cout, HW = o_ref.shape[1], o_ref.shape[2]

    masks = m_ref[...]                      # (2, HW), precomputed in the wrapper
    m_first = masks[0:1]                    # (1, HW): output column c >= 1   (dx == 0 taps)
    m_last = masks[1:2]                     # (1, HW): output column c <= W-2 (dx == 2 taps)
    w = w_ref[...]                          # (9, Cout, Cin)

    for b in range(Nb):                     # static unrolled loop over batched images
        xf = x_ref[b]                       # (Cin, L)

        # One f32 accumulator per dx group so the horizontal-boundary mask can be
        # applied once after the matmuls (exact: mask commutes with the Cin-contraction).
        acc = [jnp.zeros((Cout, HW), jnp.float32) for _ in range(3)]
        for dy in range(3):
            for dx in range(3):
                start = dy * W + dx                        # static lane offset of this tap
                tap = xf[:, start:start + HW]              # (Cin, HW) static lane window
                acc[dx] = acc[dx] + jnp.dot(w[dy * 3 + dx], tap,
                                            preferred_element_type=jnp.float32)

        out = acc[1] + m_first * acc[0] + m_last * acc[2]
        o_ref[b] = jnp.maximum(out, 0.0).astype(o_ref.dtype)   # fused ReLU


def conv_relu(x_nchw, w_oihw, *, min_grid_steps=2):
    """F.relu(conv2d(x, w, stride=1, padding=1, bias=False)); x NCHW, w OIHW."""
    N, Cin, H, W = x_nchw.shape
    Cout, wc, KH, KW = w_oihw.shape
    assert (KH, KW) == (3, 3) and wc == Cin, "kernel implements the 3x3/s1/p1 config"
    HW = H * W
    L = HW + 2 * W + 2

    # Pick batch block Nb: largest divisor of N that keeps >= min(N, min_grid_steps)
    # grid steps (>= 2 steps keeps both v7x TensorCores busy; bigger Nb amortizes the
    # per-grid-step overhead that dominates at these tiny shapes).
    target_steps = min(N, max(1, min_grid_steps))
    nb = 1
    for cand in range(N, 0, -1):
        if N % cand == 0 and N // cand >= target_steps:
            nb = cand
            break
    steps = N // nb

    # Free reshape (NCHW is row-major) + tiny 1-D pad: one zero row above, one below,
    # plus one guard element each side so every tap window start (dy*W+dx) is valid.
    xflat = jnp.pad(x_nchw.reshape(N, Cin, HW), ((0, 0), (0, 0), (W + 1, W + 1)))
    # (Cout, Cin, 3, 3) -> (9, Cout, Cin), tap-major.
    w_taps = jnp.transpose(w_oihw, (2, 3, 0, 1)).reshape(9, Cout, Cin)
    # Precomputed horizontal-boundary masks (vertical boundary = zero-padded rows).
    col = jnp.arange(HW, dtype=jnp.int32) % W
    masks = jnp.stack([(col >= 1).astype(jnp.float32),
                       (col <= W - 2).astype(jnp.float32)])          # (2, HW)

    out = pl.pallas_call(
        functools.partial(_conv_relu_kernel, W=W),
        out_shape=jax.ShapeDtypeStruct((N, Cout, HW), jnp.float32),
        grid=(steps,),
        in_specs=[
            pl.BlockSpec((nb, Cin, L), lambda n: (n, 0, 0)),
            pl.BlockSpec((9, Cout, Cin), lambda n: (0, 0, 0)),
            pl.BlockSpec((2, HW), lambda n: (0, 0)),
        ],
        out_specs=pl.BlockSpec((nb, Cout, HW), lambda n: (n, 0, 0)),
        compiler_params=pltpu.CompilerParams(
            dimension_semantics=("parallel",)),  # shards batch blocks across TCs on v7x
    )(xflat, w_taps, masks)

    return out.reshape(N, Cout, H, W)  # back to NCHW (free reshape)


def ref_conv_relu(x, w):
    out = jax.lax.conv_general_dilated(
        x, w, window_strides=(1, 1), padding=((1, 1), (1, 1)),
        dimension_numbers=("NCHW", "OIHW", "NCHW"),
        precision=jax.lax.Precision.HIGHEST)
    return jnp.maximum(out, 0.0)


if __name__ == "__main__":
    N, Cin, Cout, H, W = 2, 4, 8, 16, 16

    key = jax.random.PRNGKey(0)
    kx, kw = jax.random.split(key)
    x = jax.random.normal(kx, (N, Cin, H, W), jnp.float32)
    w = 0.1 * jax.random.normal(kw, (Cout, Cin, 3, 3), jnp.float32)

    out = conv_relu(x, w)
    jax.block_until_ready(out)

    ref = ref_conv_relu(x, w)
    np.testing.assert_allclose(np.asarray(out), np.asarray(ref),
                               rtol=1e-4, atol=1e-4)
    print("KERNEL_OK")
</pallas_src>

<mosaic_0001>
module attributes {stable_mosaic.version = 11 : i64} {
  func.func @_conv_relu_kernel(%arg0: i32, %arg1: memref<1x4x290xf32, #tpu.memory_space<vmem>>, %arg2: memref<9x8x4xf32, #tpu.memory_space<vmem>>, %arg3: memref<2x256xf32, #tpu.memory_space<vmem>>, %arg4: memref<1x8x256xf32, #tpu.memory_space<vmem>>) attributes {dimension_semantics = [#tpu.dimension_semantics<parallel>], iteration_bounds = array<i64: 2>, scalar_prefetch = 0 : i64, scratch_operands = 0 : i64, tpu.core_type = #tpu.core_type<tc>, window_params = [{transform_indices = @transform_0, window_bounds = array<i64: 1, 4, 290>}, {pipeline_mode = #tpu.pipeline_mode<synchronous>, transform_indices = @transform_1, window_bounds = array<i64: 9, 8, 4>}, {pipeline_mode = #tpu.pipeline_mode<synchronous>, transform_indices = @transform_2, window_bounds = array<i64: 2, 256>}, {transform_indices = @transform_3, window_bounds = array<i64: 1, 8, 256>}]} {
    %c0 = arith.constant 0 : index
    %c0_0 = arith.constant 0 : index
    %0 = vector.load %arg3[%c0, %c0_0] : memref<2x256xf32, #tpu.memory_space<vmem>>, vector<2x256xf32>
    %1 = vector.extract_strided_slice %0 {offsets = [0, 0], sizes = [1, 256], strides = [1, 1]} : vector<2x256xf32> to vector<1x256xf32>
    %2 = vector.extract_strided_slice %0 {offsets = [1, 0], sizes = [1, 256], strides = [1, 1]} : vector<2x256xf32> to vector<1x256xf32>
    %c0_1 = arith.constant 0 : index
    %c0_2 = arith.constant 0 : index
    %c0_3 = arith.constant 0 : index
    %3 = vector.load %arg2[%c0_1, %c0_2, %c0_3] : memref<9x8x4xf32, #tpu.memory_space<vmem>>, vector<9x8x4xf32>
    %c0_4 = arith.constant 0 : index
    %c0_5 = arith.constant 0 : index
    %c0_6 = arith.constant 0 : index
    %4 = vector.load %arg1[%c0_4, %c0_5, %c0_6] : memref<1x4x290xf32, #tpu.memory_space<vmem>>, vector<1x4x290xf32>
    %5 = vector.shape_cast %4 : vector<1x4x290xf32> to vector<4x290xf32>
    %cst = arith.constant 0.000000e+00 : f32
    %6 = vector.broadcast %cst : f32 to vector<8x256xf32>
    %cst_7 = arith.constant 0.000000e+00 : f32
    %7 = vector.broadcast %cst_7 : f32 to vector<8x256xf32>
    %cst_8 = arith.constant 0.000000e+00 : f32
    %8 = vector.broadcast %cst_8 : f32 to vector<8x256xf32>
    %9 = vector.extract_strided_slice %5 {offsets = [0, 0], sizes = [4, 256], strides = [1, 1]} : vector<4x290xf32> to vector<4x256xf32>
    %10 = vector.extract_strided_slice %3 {offsets = [0, 0, 0], sizes = [1, 8, 4], strides = [1, 1, 1]} : vector<9x8x4xf32> to vector<1x8x4xf32>
    %11 = vector.shape_cast %10 : vector<1x8x4xf32> to vector<8x4xf32>
    %cst_9 = arith.constant dense<0.000000e+00> : vector<8x256xf32>
    %12 = tpu.matmul %11, %9, %cst_9 {dimension_numbers = #tpu.dot_dimension_numbers<[1], [0], [0], [1], [0, 0, 1, 1], [], []>} : vector<8x4xf32>, vector<4x256xf32>, vector<8x256xf32> -> vector<8x256xf32>
    %13 = arith.addf %6, %12 : vector<8x256xf32>
    %14 = vector.extract_strided_slice %5 {offsets = [0, 1], sizes = [4, 256], strides = [1, 1]} : vector<4x290xf32> to vector<4x256xf32>
    %15 = vector.extract_strided_slice %3 {offsets = [1, 0, 0], sizes = [1, 8, 4], strides = [1, 1, 1]} : vector<9x8x4xf32> to vector<1x8x4xf32>
    %16 = vector.shape_cast %15 : vector<1x8x4xf32> to vector<8x4xf32>
    %cst_10 = arith.constant dense<0.000000e+00> : vector<8x256xf32>
    %17 = tpu.matmul %16, %14, %cst_10 {dimension_numbers = #tpu.dot_dimension_numbers<[1], [0], [0], [1], [0, 0, 1, 1], [], []>} : vector<8x4xf32>, vector<4x256xf32>, vector<8x256xf32> -> vector<8x256xf32>
    %18 = arith.addf %7, %17 : vector<8x256xf32>
    %19 = vector.extract_strided_slice %5 {offsets = [0, 2], sizes = [4, 256], strides = [1, 1]} : vector<4x290xf32> to vector<4x256xf32>
    %20 = vector.extract_strided_slice %3 {offsets = [2, 0, 0], sizes = [1, 8, 4], strides = [1, 1, 1]} : vector<9x8x4xf32> to vector<1x8x4xf32>
    %21 = vector.shape_cast %20 : vector<1x8x4xf32> to vector<8x4xf32>
    %cst_11 = arith.constant dense<0.000000e+00> : vector<8x256xf32>
    %22 = tpu.matmul %21, %19, %cst_11 {dimension_numbers = #tpu.dot_dimension_numbers<[1], [0], [0], [1], [0, 0, 1, 1], [], []>} : vector<8x4xf32>, vector<4x256xf32>, vector<8x256xf32> -> vector<8x256xf32>
    %23 = arith.addf %8, %22 : vector<8x256xf32>
    %24 = vector.extract_strided_slice %5 {offsets = [0, 16], sizes = [4, 256], strides = [1, 1]} : vector<4x290xf32> to vector<4x256xf32>
    %25 = vector.extract_strided_slice %3 {offsets = [3, 0, 0], sizes = [1, 8, 4], strides = [1, 1, 1]} : vector<9x8x4xf32> to vector<1x8x4xf32>
    %26 = vector.shape_cast %25 : vector<1x8x4xf32> to vector<8x4xf32>
    %cst_12 = arith.constant dense<0.000000e+00> : vector<8x256xf32>
    %27 = tpu.matmul %26, %24, %cst_12 {dimension_numbers = #tpu.dot_dimension_numbers<[1], [0], [0], [1], [0, 0, 1, 1], [], []>} : vector<8x4xf32>, vector<4x256xf32>, vector<8x256xf32> -> vector<8x256xf32>
    %28 = arith.addf %13, %27 : vector<8x256xf32>
    %29 = vector.extract_strided_slice %5 {offsets = [0, 17], sizes = [4, 256], strides = [1, 1]} : vector<4x290xf32> to vector<4x256xf32>
    %30 = vector.extract_strided_slice %3 {offsets = [4, 0, 0], sizes = [1, 8, 4], strides = [1, 1, 1]} : vector<9x8x4xf32> to vector<1x8x4xf32>
    %31 = vector.shape_cast %30 : vector<1x8x4xf32> to vector<8x4xf32>
    %cst_13 = arith.constant dense<0.000000e+00> : vector<8x256xf32>
    %32 = tpu.matmul %31, %29, %cst_13 {dimension_numbers = #tpu.dot_dimension_numbers<[1], [0], [0], [1], [0, 0, 1, 1], [], []>} : vector<8x4xf32>, vector<4x256xf32>, vector<8x256xf32> -> vector<8x256xf32>
    %33 = arith.addf %18, %32 : vector<8x256xf32>
    %34 = vector.extract_strided_slice %5 {offsets = [0, 18], sizes = [4, 256], strides = [1, 1]} : vector<4x290xf32> to vector<4x256xf32>
    %35 = vector.extract_strided_slice %3 {offsets = [5, 0, 0], sizes = [1, 8, 4], strides = [1, 1, 1]} : vector<9x8x4xf32> to vector<1x8x4xf32>
    %36 = vector.shape_cast %35 : vector<1x8x4xf32> to vector<8x4xf32>
    %cst_14 = arith.constant dense<0.000000e+00> : vector<8x256xf32>
    %37 = tpu.matmul %36, %34, %cst_14 {dimension_numbers = #tpu.dot_dimension_numbers<[1], [0], [0], [1], [0, 0, 1, 1], [], []>} : vector<8x4xf32>, vector<4x256xf32>, vector<8x256xf32> -> vector<8x256xf32>
    %38 = arith.addf %23, %37 : vector<8x256xf32>
    %39 = vector.extract_strided_slice %5 {offsets = [0, 32], sizes = [4, 256], strides = [1, 1]} : vector<4x290xf32> to vector<4x256xf32>
    %40 = vector.extract_strided_slice %3 {offsets = [6, 0, 0], sizes = [1, 8, 4], strides = [1, 1, 1]} : vector<9x8x4xf32> to vector<1x8x4xf32>
    %41 = vector.shape_cast %40 : vector<1x8x4xf32> to vector<8x4xf32>
    %cst_15 = arith.constant dense<0.000000e+00> : vector<8x256xf32>
    %42 = tpu.matmul %41, %39, %cst_15 {dimension_numbers = #tpu.dot_dimension_numbers<[1], [0], [0], [1], [0, 0, 1, 1], [], []>} : vector<8x4xf32>, vector<4x256xf32>, vector<8x256xf32> -> vector<8x256xf32>
    %43 = arith.addf %28, %42 : vector<8x256xf32>
    %44 = vector.extract_strided_slice %5 {offsets = [0, 33], sizes = [4, 256], strides = [1, 1]} : vector<4x290xf32> to vector<4x256xf32>
    %45 = vector.extract_strided_slice %3 {offsets = [7, 0, 0], sizes = [1, 8, 4], strides = [1, 1, 1]} : vector<9x8x4xf32> to vector<1x8x4xf32>
    %46 = vector.shape_cast %45 : vector<1x8x4xf32> to vector<8x4xf32>
    %cst_16 = arith.constant dense<0.000000e+00> : vector<8x256xf32>
    %47 = tpu.matmul %46, %44, %cst_16 {dimension_numbers = #tpu.dot_dimension_numbers<[1], [0], [0], [1], [0, 0, 1, 1], [], []>} : vector<8x4xf32>, vector<4x256xf32>, vector<8x256xf32> -> vector<8x256xf32>
    %48 = arith.addf %33, %47 : vector<8x256xf32>
    %49 = vector.extract_strided_slice %5 {offsets = [0, 34], sizes = [4, 256], strides = [1, 1]} : vector<4x290xf32> to vector<4x256xf32>
    %50 = vector.extract_strided_slice %3 {offsets = [8, 0, 0], sizes = [1, 8, 4], strides = [1, 1, 1]} : vector<9x8x4xf32> to vector<1x8x4xf32>
    %51 = vector.shape_cast %50 : vector<1x8x4xf32> to vector<8x4xf32>
    %cst_17 = arith.constant dense<0.000000e+00> : vector<8x256xf32>
    %52 = tpu.matmul %51, %49, %cst_17 {dimension_numbers = #tpu.dot_dimension_numbers<[1], [0], [0], [1], [0, 0, 1, 1], [], []>} : vector<8x4xf32>, vector<4x256xf32>, vector<8x256xf32> -> vector<8x256xf32>
    %53 = arith.addf %38, %52 : vector<8x256xf32>
    %54 = vector.broadcast %1 : vector<1x256xf32> to vector<8x256xf32>
    %55 = arith.mulf %54, %43 : vector<8x256xf32>
    %56 = arith.addf %48, %55 : vector<8x256xf32>
    %57 = vector.broadcast %2 : vector<1x256xf32> to vector<8x256xf32>
    %58 = arith.mulf %57, %53 : vector<8x256xf32>
    %59 = arith.addf %56, %58 : vector<8x256xf32>
    %cst_18 = arith.constant 0.000000e+00 : f32
    %60 = vector.broadcast %cst_18 : f32 to vector<8x256xf32>
    %61 = arith.maximumf %59, %60 : vector<8x256xf32>
    %c0_19 = arith.constant 0 : index
    %c0_20 = arith.constant 0 : index
    %c0_21 = arith.constant 0 : index
    %62 = vector.load %arg4[%c0_19, %c0_20, %c0_21] : memref<1x8x256xf32, #tpu.memory_space<vmem>>, vector<1x8x256xf32>
    %63 = vector.shape_cast %62 : vector<1x8x256xf32> to vector<8x256xf32>
    %64 = vector.shape_cast %61 : vector<8x256xf32> to vector<1x8x256xf32>
    tpu.vector_store %arg4[%c0_19, %c0_20, %c0_21], %64 {strides = array<i32>} : memref<1x8x256xf32, #tpu.memory_space<vmem>>, vector<1x8x256xf32>,
    return
  }
  func.func @transform_0(%arg0: i32) -> (i32, i32, i32) {
    %c0_i32 = arith.constant 0 : i32
    %c0_i32_0 = arith.constant 0 : i32
    %c0_i32_1 = arith.constant 0 : i32
    return %arg0, %c0_i32, %c0_i32_0 : i32, i32, i32
  }
  func.func @transform_1(%arg0: i32) -> (i32, i32, i32) {
    %c0_i32 = arith.constant 0 : i32
    %c0_i32_0 = arith.constant 0 : i32
    %c0_i32_1 = arith.constant 0 : i32
    %c0_i32_2 = arith.constant 0 : i32
    return %c0_i32, %c0_i32_0, %c0_i32_1 : i32, i32, i32
  }
  func.func @transform_2(%arg0: i32) -> (i32, i32) {
    %c0_i32 = arith.constant 0 : i32
    %c0_i32_0 = arith.constant 0 : i32
    %c0_i32_1 = arith.constant 0 : i32
    return %c0_i32, %c0_i32_0 : i32, i32
  }
  func.func @transform_3(%arg0: i32) -> (i32, i32, i32) {
    %c0_i32 = arith.constant 0 : i32
    %c0_i32_0 = arith.constant 0 : i32
    %c0_i32_1 = arith.constant 0 : i32
    return %arg0, %c0_i32, %c0_i32_0 : i32, i32, i32
  }
}

</mosaic_0001>

<bundles_post_ra>
// kernel: tpu_custom_call.1
= control target key start
LH: loop header
LB: loop body
LE: loop exit
PB: predicated region body
PF: predicated region fallthrough
CT: control target
= control target key end

     0   :  { %8 = vsyncpa [#allocation3], 0  ;;  %s1454_s0 = inlined_call_operand.vmem [shape: f32[2,4,290], index: 0, kind: input, shape index: {}]   ;;  %s1455_s1 = inlined_call_operand.vmem [shape: f32[9,8,4], index: 1, kind: input, shape index: {}]   ;;  %s1456_s2 = inlined_call_operand.vmem [shape: f32[2,256], index: 2, kind: input, shape index: {}]   ;;  %s1457_s3 = inlined_call_operand.hbm [shape: f32[2,8,256], index: 3, kind: output, shape index: {}]  }
   0x1   :  { %10 = vsyncpa [#allocation3 + $0x1], 0  ;;  %s1284_s12 = smov 0   ;;  %s1286_s13 = smov 0  }
   0x2   :  { %s1288_s14 = smov 0   ;;  %s1290_s15 = smov 0  }
   0x3 LB: > { %s1305_s16 = sadd.s32 4294967295, %s1252_s15   ;;  %s1089_s17 = sadd.s32 4294967294, %s1252_s15   ;;  %s1252_s15 = sphi %s1290_s15, %s1463_s15   ;;  %s1248_s14 = sphi %s1288_s14, %s1462_s14   ;;  %s1244_s13 = sphi %s1286_s13, %s1461_s13   ;;  %s1240_s12 = sphi %s1284_s12, %s1460_s12  }
   0x4   : > { %s1309_s18 = sadd.s32 1, %s1252_s15   ;;  %s91_s19 = sadd.s32 1, %s1248_s14 }
   0x5   : > { %s88_s20 = ssub.s32 %s1252_s15, %s1309_s18  ;;  %p101_p0 = scmp.ne.s32.totalorder %s1248_s14, %s1244_s13 }
   0x6   : > { %p89_p1 = scmp.eq.s32.totalorder %s88_s20, 0  ;;  %p102_p2 = scmp.eq.s32.totalorder %s1305_s16, 1 }
   0x7   : > { %p107_p3 = scmp.ne.s32.totalorder %s1244_s13, %s1240_s12  ;;  %p108_p4 = scmp.eq.s32.totalorder %s1089_s17, 1 }
   0x8   : > { %s1320_s21 = scalar_select %p89_p1, %s1248_s14, %s91_s19  }
   0x9   : > { %p1322_p5 = por %p102_p2, %p101_p0  ;;  %p1326_p6 = por %p108_p4, %p107_p3 }
   0xa   : > { %p1092_p7 = scmp.ge.s32.totalorder %s1252_s15, 1  ;;  %p140_p8 = scmp.lt.s32.totalorder %s1252_s15, 3 }
   0xc   : > { %p141_p9 = pnand %p1092_p7, %p140_p8 }
   0xd   : > { %p164_p10 = scmp.lt.s32.totalorder (!%p141_p9), %s1305_s16, 1  ;;  %v1254_v2 = vmov (!%p141_p9), 0.0   ;;  %s1255_s29 = smov (!%p141_p9), 112   ;;  %vm197_vm0 = vcmask (!%p141_p9), 1043456   ;;  %v170_v4 = vld [vmem:[%s1455_s1] sm:$0xff] (!%p141_p9)  ;;  %vm193_vm1 = vcmask (!%p141_p9), 31744   ;;  %v967_v55 = vlaneseq (!%p141_p9) }
   0xe   : > { %144 = sbr.rel (%p141_p9) target bundleno = 421 (0x1a5), region = 32  ;;  %266 = vmatprep.mubr.f32.mxu1 (!%p141_p9), %v1254_v2  ;;  %344 = vmatprep.mubr.f32.mxu0 (!%p141_p9), %v1254_v2  ;;  %s1256_s5 = smov (!%p141_p9), 111   ;;  %vm190_vm2 = vcmask (!%p141_p9), 916480   ;;  %vm357_vm3 = vcmask (!%p141_p9), 908288   ;;  %v173_v13 = vld [vmem:[%s1455_s1 + $0x18] sm:$0xff] (!%p141_p9)  ;;  %vm531_vm4 = vcmask (!%p141_p9), 900096  }
   0xf   : > { %s1257_s6 = smov (!%p141_p9), 110   ;;  %s1258_s7 = smov (!%p141_p9), 127   ;;  %v174_v19 = vld [vmem:[%s1455_s1 + $0x20] sm:$0xff] (!%p141_p9)  ;;  %v175_v22 = vld [vmem:[%s1455_s1 + $0x28] sm:$0xff] (!%p141_p9)  ;;  %vm444_vm5 = vcmask (!%p141_p9), 1039360   ;;  %vm618_vm6 = vcmask (!%p141_p9), 1031168  }
  0x10   : > { %s1259_s8 = smov (!%p141_p9), 126   ;;  %s1260_s9 = smov (!%p141_p9), 96   ;;  %v171_v29 = vld [vmem:[%s1455_s1 + $0x8] sm:$0xff] (!%p141_p9)  ;;  %v172_v34 = vld [vmem:[%s1455_s1 + $0x10] sm:$0xff] (!%p141_p9)  ;;  %vm705_vm7 = vcmask (!%p141_p9), 785408   ;;  %vm794_vm8 = vcmask (!%p141_p9), 777216  }
  0x11   : > { %s1261_s10 = smov (!%p141_p9), 95   ;;  %s1262_s11 = smov (!%p141_p9), 94   ;;  %v176_v40 = vld [vmem:[%s1455_s1 + $0x30] sm:$0xff] (!%p141_p9)  ;;  %vm883_vm9 = vcmask (!%p141_p9), 769024   ;;  %v177_v49 = vld [vmem:[%s1455_s1 + $0x38] sm:$0xff] (!%p141_p9)  ;;  %v178_v50 = vld [vmem:[%s1455_s1 + $0x40] sm:$0xff] (!%p141_p9) }
  0x12   : > { %v968_v56 = vshrl.u32 (!%p141_p9), %v967_v55, 7  ;;  %v169_v58 = vld [vmem:[%s1456_s2] sm:$0xf] (!%p141_p9)  ;;  %s161_s17 = sand.u32 (!%p141_p9), 1, %s1244_s13   ;;  %s1127_s20 = sshll.u32 (!%p141_p9), %s1305_s16, 8 }
  0x13   : > { %s1093_s19 = sshll.u32 (!%p141_p9), %s161_s17, 4 }
  0x14   : > { %v969_v57 = vsub.s32 (!%p141_p9), 0, %v968_v56  ;;  %v973_v59 = vsub.s32 (!%p141_p9), 2, %v968_v56  ;;  %v991_v61 = vsub.s32 (!%p141_p9), 1, %v968_v56 }
  0x15   : > { %s165_s24 = scalar_select %p164_p10, %s1305_s16, 1 }
  0x16   : > { %s1263_s16 = smov [#allocation2]  }
  0x17   : > { %s1140_s25 = smul.u32 12, %s165_s24  ;;  %s163_s24 = scalar_lea.vmem [#allocation2], %s1093_s19 }
  0x18   : > { %s1194_s4 = sshll.u32 %s1263_s16, 4  ;;  %s1195_s4 = int_to_ptr.vmem [resolvable:$false] %s1194_s4 }
  0x19   : > { %s168_s28 = scalar_lea.vmem %s1454_s0, %s1140_s25  ;;  %s1030_s25 = sshll.u32 %s163_s24, 4  ;;  %s1414_s25 = int_to_ptr.vmem [resolvable:$true] %s1030_s25 }
  0x1a   : > { %v180_v0 = vld [vmem:[%s168_s28 + $0x8] sm:$0xf]  ;;  %v179_v1 = vld [vmem:[%s168_s28] sm:$0xff]  ;;  %s1412_s28 = scalar_lea.hbm %s1457_s3, %s1127_s20  ;;  %s1190_s30 = scalar_lea.vmem %s1414_s25, 256 }
  0x1b   : > { %188 = vrot.lane.b32.xlu0 %v180_v0, %s1255_s29  ;;  %184 = vrot.lane.b32.xlu1 %v179_v1, %s1255_s29  ;;  %v183_v3 = vcombine.high %v179_v1, %v179_v1  ;;  %p1191_p11 = scmp.ne.s32.totalorder %s1414_s25, %s1190_s30  ;;  %p1197_p0 = scmp.lt.s32.totalorder %s1414_s25, %s1195_s4 }
  0x1d   : > { %1098 = vmatprep.subr.msk.mxu0 %vm197_vm0, %v183_v3  ;;  %p1192_p12 = pnand %p1191_p11, %p1322_p5 }
  0x1e   : > { %1099 = vmatpush1.msk.msra.mxu0 %vm197_vm0, %v179_v1 }
  0x1f   : > { %355 = vrot.lane.b32.xlu0 %v180_v0, %s1256_s5  ;;  %353 = vrot.lane.b32.xlu1 %v183_v3, %s1256_s5  ;;  %p1193_p13 = pneg %p1192_p12 }
  0x20   : > { %1100 = vmatmul.mubr.msk.f32.vlgmr.msra.gmra.mrb[0].mxu0 %vm193_vm1, %v170_v4  ;;  %v992_v4 = vrot.slane %v169_v58, %v991_v61 }
  0x21   : > { %605 = vmatprep.mubr.f32.mxu0 %v1254_v2 }
  0x23   : > { %527 = vrot.lane.b32.xlu1 %v183_v3, %s1257_s6  ;;  %186 = vrot.lane.b32.xlu0 %v183_v3, %s1255_s29  ;;  %s1016_s29 = scalar_lea.sflag [#allocation3], %s161_s17 }
  0x27   : > { %351 = vrot.lane.b32.xlu1 %v179_v1, %s1256_s5  ;;  %529 = vrot.lane.b32.xlu0 %v180_v0, %s1257_s6  ;;  %s1196_s5 = scalar_lea.vmem %s1195_s4, 512 }
  0x28   : > { %p1198_p1 = scmp.lt.s32.totalorder %s1196_s5, %s1190_s30 }
  0x2a   : > { %p1199_p2 = por %p1198_p1, %p1197_p0 }
  0x2b   : > { %440 = vrot.lane.b32.xlu1 %v183_v3, %s1258_s7  ;;  %525 = vrot.lane.b32.xlu0 %v179_v1, %s1257_s6 }
  0x2c   : > { %p1200_p3 = pnand %p1199_p2, %p1193_p13 }
  0x2f   : > { %614 = vrot.lane.b32.xlu1 %v183_v3, %s1259_s8  ;;  %442 = vrot.lane.b32.xlu0 %v180_v0, %s1258_s7 }
  0x33   : > { %438 = vrot.lane.b32.xlu1 %v179_v1, %s1258_s7  ;;  %616 = vrot.lane.b32.xlu0 %v180_v0, %s1259_s8 }
  0x37   : > { %701 = vrot.lane.b32.xlu1 %v183_v3, %s1260_s9  ;;  %612 = vrot.lane.b32.xlu0 %v179_v1, %s1259_s8 }
  0x3b   : > { %699 = vrot.lane.b32.xlu1 %v179_v1, %s1260_s9  ;;  %703 = vrot.lane.b32.xlu0 %v180_v0, %s1260_s9 }
  0x3f   : > { %792 = vrot.lane.b32.xlu1 %v180_v0, %s1261_s10  ;;  %790 = vrot.lane.b32.xlu0 %v183_v3, %s1261_s10 }
  0x43   : > { %881 = vrot.lane.b32.xlu1 %v180_v0, %s1262_s11  ;;  %879 = vrot.lane.b32.xlu0 %v183_v3, %s1262_s11  ;;  %v995_v0 = vsub.s32 3, %v968_v56  ;;  %v974_v3 = vrot.slane %v169_v58, %v973_v59 }
  0x47   : > { %877 = vrot.lane.b32.xlu1 %v179_v1, %s1262_s11  ;;  %788 = vrot.lane.b32.xlu0 %v179_v1, %s1261_s10 }
  0x8d   : > { %v189_v5 = vpop.permute.xlu0 %188  ;;  %v185_v6 = vpop.permute.xlu1 %184 }
  0x91   : > { %v356_v7 = vpop.permute.xlu0 %355  ;;  %v354_v8 = vpop.permute.xlu1 %353 }
  0x92   : > { %v359_v14 = vsel %vm357_vm3, %v354_v8, %v356_v7  ;;  %v984_v7 = vrot.slane %v974_v3, %v969_v57 }
  0x95   : > { %v528_v9 = vpop.permute.xlu1 %527  ;;  %v187_v10 = vpop.permute.xlu0 %186 }
  0x96   : > { %v192_v11 = vsel %vm190_vm2, %v187_v10, %v189_v5  ;;  %v191_v12 = vsel %vm190_vm2, %v185_v6, %v187_v10  ;;  %v996_v5 = vrot.slane %v169_v58, %v995_v0 }
  0x97   : > { %1095 = vmatprep.subr.msk.mxu1 %vm197_vm0, %v192_v11 }
  0x98   : > { %1096 = vmatpush1.msk.msra.mxu1 %vm197_vm0, %v191_v12 }
  0x99   : > { %v352_v15 = vpop.permute.xlu1 %351  ;;  %1101 = vmatprep.subr.msk.mxu1 %vm197_vm0, %v359_v14  ;;  %v530_v16 = vpop.permute.xlu0 %529  ;;  %1097 = vmatmul.mubr.msk.f32.vlgmr.msra.gmra.mrb[0].mxu1 %vm193_vm1, %v173_v13 }
  0x9a   : > { %v358_v17 = vsel %vm357_vm3, %v352_v15, %v354_v8  ;;  %v533_v18 = vsel %vm531_vm4, %v528_v9, %v530_v16  ;;  %431 = vmatprep.mubr.f32.mxu1 %v1254_v2  ;;  %v1002_v8 = vrot.slane %v992_v4, %v991_v61 }
  0x9b   : > { %1102 = vmatpush1.msk.msra.mxu1 %vm197_vm0, %v358_v17  ;;  %1107 = vmatprep.subr.msk.mxu0 %vm197_vm0, %v533_v18 }
  0x9d   : > { %v441_v20 = vpop.permute.xlu1 %440  ;;  %v526_v21 = vpop.permute.xlu0 %525  ;;  %1103 = vmatmul.mubr.msk.f32.vlgmr.msra.gmra.mrb[2].mxu1 %vm193_vm1, %v174_v19 }
  0x9e   : > { %v532_v23 = vsel %vm531_vm4, %v526_v21, %v528_v9  ;;  %518 = vmatprep.mubr.f32.mxu1 %v1254_v2  ;;  %v1006_v9 = vrot.slane %v996_v5, %v991_v61 }
  0x9f   : > { %1108 = vmatpush1.msk.msra.mxu0 %vm197_vm0, %v532_v23 }
  0xa0   : > { %1109 = vmatmul.mubr.msk.f32.vlgmr.msra.gmra.mrb[2].mxu0 %vm193_vm1, %v175_v22 }
  0xa1   : > { %v615_v24 = vpop.permute.xlu1 %614  ;;  %v443_v25 = vpop.permute.xlu0 %442  ;;  %692 = vmatprep.mubr.f32.mxu0 %v1254_v2 }
  0xa2   : > { %v446_v26 = vsel %vm444_vm5, %v441_v20, %v443_v25 }
  0xa3   : > { %1104 = vmatprep.subr.msk.mxu1 %vm197_vm0, %v446_v26 }
  0xa5   : > { %v439_v27 = vpop.permute.xlu1 %438  ;;  %v617_v28 = vpop.permute.xlu0 %616 }
  0xa6   : > { %v445_v30 = vsel %vm444_vm5, %v439_v27, %v441_v20  ;;  %v620_v31 = vsel %vm618_vm6, %v615_v24, %v617_v28 }
  0xa7   : > { %1105 = vmatpush1.msk.msra.mxu1 %vm197_vm0, %v445_v30  ;;  %1110 = vmatprep.subr.msk.mxu0 %vm197_vm0, %v620_v31 }
  0xa8   : > { %1106 = vmatmul.mubr.msk.f32.vlgmr.msra.gmra.mrb[2].mxu1 %vm193_vm1, %v171_v29 }
  0xa9   : > { %v702_v32 = vpop.permute.xlu1 %701  ;;  %v613_v33 = vpop.permute.xlu0 %612  ;;  %868 = vmatprep.mubr.f32.mxu1 %v1254_v2 }
  0xaa   : > { %v619_v35 = vsel %vm618_vm6, %v613_v33, %v615_v24 }
  0xab   : > { %1111 = vmatpush1.msk.msra.mxu0 %vm197_vm0, %v619_v35 }
  0xac   : > { %1112 = vmatmul.mubr.msk.f32.vlgmr.msra.gmra.mrb[2].mxu0 %vm193_vm1, %v172_v34 }
  0xad   : > { %v700_v36 = vpop.permute.xlu1 %699  ;;  %v704_v37 = vpop.permute.xlu0 %703  ;;  %779 = vmatprep.mubr.f32.mxu0 %v1254_v2 }
  0xae   : > { %v706_v38 = vsel %vm705_vm7, %v700_v36, %v702_v32  ;;  %v707_v39 = vsel %vm705_vm7, %v702_v32, %v704_v37 }
  0xaf   : > { %1113 = vmatprep.subr.msk.mxu0 %vm197_vm0, %v707_v39 }
  0xb0   : > { %1114 = vmatpush1.msk.msra.mxu0 %vm197_vm0, %v706_v38 }
  0xb1   : > { %v793_v41 = vpop.permute.xlu1 %792  ;;  %v791_v42 = vpop.permute.xlu0 %790  ;;  %1115 = vmatmul.mubr.msk.f32.vlgmr.msra.gmra.mrb[0].mxu0 %vm193_vm1, %v176_v40 }
  0xb2   : > { %v796_v43 = vsel %vm794_vm8, %v791_v42, %v793_v41  ;;  %957 = vmatprep.mubr.f32.mxu0 %v1254_v2  ;;  %v970_v2 = vrot.slane %v169_v58, %v969_v57 }
  0xb3   : > { %1116 = vmatprep.subr.msk.mxu1 %vm197_vm0, %v796_v43 }
  0xb4   : > { %v980_v6 = vrot.slane %v970_v2, %v969_v57 }
  0xb5   : > { %v882_v44 = vpop.permute.xlu1 %881  ;;  %v880_v45 = vpop.permute.xlu0 %879 }
  0xb6   : > { %v885_v46 = vsel %vm883_vm9, %v880_v45, %v882_v44 }
  0xb7   : > { %1119 = vmatprep.subr.msk.mxu0 %vm197_vm0, %v885_v46 }
  0xb9   : > { %v878_v47 = vpop.permute.xlu1 %877  ;;  %v789_v48 = vpop.permute.xlu0 %788 }
  0xba   : > { %v884_v51 = vsel %vm883_vm9, %v878_v47, %v880_v45  ;;  %v795_v52 = vsel %vm794_vm8, %v789_v48, %v791_v42 }
  0xbb   : > { %1117 = vmatpush1.msk.msra.mxu1 %vm197_vm0, %v795_v52  ;;  %1120 = vmatpush1.msk.msra.mxu0 %vm197_vm0, %v884_v51 }
  0xbc   : > { %1118 = vmatmul.mubr.msk.f32.vlgmr.msra.gmra.mrb[2].mxu1 %vm193_vm1, %v177_v49  ;;  %1121 = vmatmul.mubr.msk.f32.vlgmr.msra.gmra.mrb[2].mxu0 %vm193_vm1, %v178_v50 }
 0x16c   : > { %v268_v53 = vpop.f32.mrb[0].mxu1 }
 0x16d   : > { %v270_v54 = vpop.f32.mrb[1].mxu1 }
 0x184   : > { %v781_v60 = vpop.f32.mrb[0].mxu0 }
 0x185   : > { %v1128_v62 = vadd.f32 %v781_v60, %v268_v53  ;;  %v783_v63 = vpop.f32.mrb[1].mxu0 }
 0x186   : > { %v1129_v1 = vadd.f32 %v783_v63, %v270_v54 }
 0x187   : > { %v985_v10 = vmul.f32 %v1128_v62, %v980_v6 }
 0x188   : > { %v986_v13 = vmul.f32 %v1129_v1, %v984_v7 }
 0x18f   : > { %v870_v11 = vpop.f32.mrb[2].mxu1  ;;  %v959_v12 = vpop.f32.mrb[2].mxu0 }
 0x190   : > { %v987_v14 = vadd.f32 %v985_v10, %v870_v11  ;;  %v1007_v15 = vmul.f32 %v1002_v8, %v959_v12  ;;  %v872_v16 = vpop.f32.mrb[3].mxu1  ;;  %v961_v17 = vpop.f32.mrb[3].mxu0 }
 0x191   : > { %v988_v18 = vadd.f32 %v986_v13, %v872_v16  ;;  %v1008_v19 = vmul.f32 %v1006_v9, %v961_v17 }
 0x192   : > { %v1009_v20 = vadd.f32 %v1007_v15, %v987_v14 }
 0x193   : > { %v1010_v21 = vadd.f32 %v1008_v19, %v988_v18 }
 0x194   : > { %v1011_v22 = vmax.f32 %v1009_v20, 0.0 }
 0x195   : > { %v1012_v23 = vmax.f32 %v1010_v21, 0.0 }
 0x196   : > { %1013 = vst [vmem:[%s163_s24] sm:$0xff] %v1011_v22 }
 0x197   : > { %1014 = vst [vmem:[%s163_s24 + $0x8] sm:$0xff] %v1012_v23 }
 0x198   : > { %1203 = shalt.err (!%p1200_p3)
}
 0x199   : > { %s1204_s6 = scalar_lea.hbm %s1412_s28, 256  ;;  %s1208_s9 = scalar_lea.hbm %s1457_s3, 512 }
 0x19a   : > { %p1205_p4 = scmp.ne.s32.totalorder %s1412_s28, %s1204_s6  ;;  %p1209_p9 = scmp.lt.u32.totalorder %s1412_s28, %s1457_s3 }
 0x19b   : > { %p1210_p10 = scmp.lt.u32.totalorder %s1208_s9, %s1204_s6  ;;  %p1212_p12 = scmp.lt.u32.totalorder %s1204_s6, %s1412_s28 }
 0x19c   : > { %p1206_p7 = pnand %p1205_p4, %p1322_p5 }
 0x19d   : > { %p1211_p11 = por %p1210_p10, %p1209_p9 }
 0x19e   : > { %p1207_p8 = pneg %p1206_p7 }
 0x19f   : > { %p1213_p13 = por %p1212_p12, %p1211_p11 }
 0x1a1   : > { %p1214_p0 = pnand %p1213_p13, %p1207_p8 }
 0x1a3   : > { %1217 = shalt.err (!%p1214_p0)
}
 0x1a4   : > { %1141 = dma.vmem_to_hbm [thread:$0]  (%p1322_p5), %s1414_s25, 256, %s1412_s28, %s1016_s29  }
 0x1a5 PF: > { %p1147_p1 = scmp.ge.s32.totalorder %s1252_s15, 2  ;;  %s1042_s17 = sand.u32 1, %s1240_s12  }
 0x1a6   : > { %s1043_s19 = scalar_lea.sflag [#allocation3], %s1042_s17 }
 0x1a7   : > { %p1144_p2 = pnand %p1147_p1, %p1326_p6 }
 0x1a9   : > { %1235 = dma.done.wait (!%p1144_p2), %s1043_s19, 256  }
 0x1aa   : > { %1237 = vsyncadd (!%p1144_p2), %s1043_s19, 4294967040  ;;  %p13_p3 = scmp.ge.s32.totalorder %s1309_s18, 4   ;;  %s1460_s12 = smov %s1244_s13 }
 0x1ab   : > { %s1461_s13 = smov %s1248_s14  ;;  %s1462_s14 = smov %s1320_s21 }
 0x1ac   : > { %s1463_s15 = smov %s1309_s18  ;;  %15 = sbr.rel (!%p13_p3) target bundleno = 3 (0x3), region = 67 }
 0x1b3   :  { %1048 = vsyncpa [#allocation3], 1 }
 0x1b4   :  { %1050 = vsyncpa [#allocation3 + $0x1], 1 }

</bundles_post_ra>
